<compile_context>
chip_gen: v7x
topology: tpu7x:2x2x1
jax: 0.10.0
libtpu: 0.0.40
codegen_flags: <defaults>
</compile_context>

<pallas_src>
import jax
import jax.numpy as jnp
from jax.experimental import pallas as pl
from jax.experimental.pallas import tpu as pltpu


def classifier_kernel(x_ref, w1_ref, b1_ref, w2_ref, b2_ref, o_ref):
    # fc1: cast activations to bf16 in-kernel (cheap VPU convert), bf16 MXU
    # matmul with f32 accumulation.
    x_bf = x_ref[...].astype(jnp.bfloat16)
    h = jnp.dot(x_bf, w1_ref[...], preferred_element_type=jnp.float32)
    # bias + ReLU in f32 (b1 is (1, H) -> broadcasts over batch rows).
    h = jnp.maximum(h + b1_ref[...], 0.0)
    # fc2: bf16 operands, f32 accumulation; w2 is the real (H, out_dim) weight.
    y = jnp.dot(h.astype(jnp.bfloat16), w2_ref[...],
                preferred_element_type=jnp.float32)
    # sigmoid + store of the real (TB, out_dim) block (masked tail rows are fine).
    o_ref[...] = jax.nn.sigmoid(y + b2_ref[...]).astype(o_ref.dtype)


def _round_up(x, m):
    return ((x + m - 1) // m) * m


def classifier_forward(x, w1, b1, w2, b2, *, block_b=2048, min_grid_steps=2):
    """x: (B, D_in) f32; w1: (D_in, H); b1: (1, H) or (H,); w2: (H, out); b2: (1, out) or (out,)."""
    B, D_in = x.shape
    H = w1.shape[1]
    out_dim = w2.shape[1]

    # --- parameter prep (tiny, done once per call) ----------------------------
    w1_bf = w1.astype(jnp.bfloat16)
    w2_bf = w2.astype(jnp.bfloat16)
    b1r = b1.reshape(1, H).astype(jnp.float32)
    b2r = b2.reshape(1, out_dim).astype(jnp.float32)

    # --- batch tiling ----------------------------------------------------------
    # Large tiles amortize the ~0.35us/step overhead, but cap TB so the grid has
    # at least `min_grid_steps` steps when B allows (v7x megacore uses the
    # "parallel" axis). Keep the sublane dim a multiple of 8; no padding of x —
    # the partial last block is masked by Pallas.
    tb_split = _round_up(max(pl.cdiv(B, min_grid_steps), 8), 8)
    TB = max(8, min(block_b, tb_split))
    grid = (pl.cdiv(B, TB),)

    cost = pl.CostEstimate(
        flops=2 * B * D_in * H + 2 * B * H * out_dim,
        transcendentals=B * out_dim,
        bytes_accessed=(x.size * 4                       # x read as f32
                        + w1_bf.size * 2 + w2_bf.size * 2
                        + (b1r.size + b2r.size) * 4
                        + B * out_dim * 4),              # real output writeback
    )

    out = pl.pallas_call(
        classifier_kernel,
        out_shape=jax.ShapeDtypeStruct((B, out_dim), jnp.float32),
        grid=grid,
        in_specs=[
            pl.BlockSpec((TB, D_in), lambda i: (i, 0)),      # x tile (f32, cast in-kernel)
            pl.BlockSpec((D_in, H), lambda i: (0, 0)),       # w1 bf16, constant block -> resident
            pl.BlockSpec((1, H), lambda i: (0, 0)),          # b1 f32
            pl.BlockSpec((H, out_dim), lambda i: (0, 0)),    # w2 bf16 (block == full array dims)
            pl.BlockSpec((1, out_dim), lambda i: (0, 0)),    # b2 f32
        ],
        out_specs=pl.BlockSpec((TB, out_dim), lambda i: (i, 0)),
        compiler_params=pltpu.CompilerParams(
            dimension_semantics=("parallel",),               # shard batch steps across TCs on v7x
        ),
        cost_estimate=cost,
    )(x, w1_bf, b1r, w2_bf, b2r)

    return out


def init_params(key, encoder_state_dim, hidden_dim=128, output_dim=2):
    k1, k2, k3, k4 = jax.random.split(key, 4)
    # Deterministic uniform init (PyTorch-Linear-style bounds), synthetic weights.
    lim1 = 1.0 / jnp.sqrt(encoder_state_dim)
    lim2 = 1.0 / jnp.sqrt(hidden_dim)
    w1 = jax.random.uniform(k1, (encoder_state_dim, hidden_dim), jnp.float32, -lim1, lim1)
    b1 = jax.random.uniform(k2, (1, hidden_dim), jnp.float32, -lim1, lim1)
    w2 = jax.random.uniform(k3, (hidden_dim, output_dim), jnp.float32, -lim2, lim2)
    b2 = jax.random.uniform(k4, (1, output_dim), jnp.float32, -lim2, lim2)
    return w1, b1, w2, b2


def _reference(x, w1, b1, w2, b2):
    # Same math as the kernel (bf16 MXU operands, f32 accumulate), plain JAX.
    xb = x.astype(jnp.bfloat16).astype(jnp.float32)
    w1b = w1.astype(jnp.bfloat16).astype(jnp.float32)
    w2b = w2.astype(jnp.bfloat16).astype(jnp.float32)
    h = jnp.maximum(xb @ w1b + b1.reshape(1, -1), 0.0)
    hb = h.astype(jnp.bfloat16).astype(jnp.float32)
    return jax.nn.sigmoid(hb @ w2b + b2.reshape(1, -1))


if __name__ == "__main__":
    key = jax.random.PRNGKey(0)
    kx, kp, kx2 = jax.random.split(key, 3)

    encoder_state_dim = 32   # the module's `encoder_state_dim` input dim
    w1, b1, w2, b2 = init_params(kp, encoder_state_dim)

    # Small case matching the module spec.
    batch = 8
    x = jax.random.normal(kx, (batch, encoder_state_dim), jnp.float32)
    out = jax.block_until_ready(classifier_forward(x, w1, b1, w2, b2))
    ref = _reference(x, w1, b1, w2, b2)
    ref_f32 = jax.nn.sigmoid(jnp.maximum(x @ w1 + b1, 0.0) @ w2 + b2)
    assert out.shape == (batch, 2)
    assert jnp.allclose(out, ref, atol=2e-3, rtol=2e-3)
    assert jnp.allclose(out, ref_f32, atol=2e-2, rtol=2e-2)  # vs pure-f32 math (bf16 tolerance)

    # Non-multiple-of-8 batch exercises the masked partial-tile path (no padding).
    batch2 = 300
    x2 = jax.random.normal(kx2, (batch2, encoder_state_dim), jnp.float32)
    out2 = jax.block_until_ready(classifier_forward(x2, w1, b1, w2, b2))
    ref2 = _reference(x2, w1, b1, w2, b2)
    assert out2.shape == (batch2, 2)
    assert jnp.allclose(out2, ref2, atol=2e-3, rtol=2e-3)

    print("KERNEL_OK")
</pallas_src>

<mosaic_0001>
module attributes {stable_mosaic.version = 11 : i64} {
  func.func @classifier_kernel(%arg0: i32, %arg1: memref<8x32xf32, #tpu.memory_space<vmem>>, %arg2: memref<32x128xbf16, #tpu.memory_space<vmem>>, %arg3: memref<1x128xf32, #tpu.memory_space<vmem>>, %arg4: memref<128x2xbf16, #tpu.memory_space<vmem>>, %arg5: memref<1x2xf32, #tpu.memory_space<vmem>>, %arg6: memref<8x2xf32, #tpu.memory_space<vmem>>) attributes {dimension_semantics = [#tpu.dimension_semantics<parallel>], iteration_bounds = array<i64: 1>, scalar_prefetch = 0 : i64, scratch_operands = 0 : i64, tpu.core_type = #tpu.core_type<tc>, window_params = [{transform_indices = @transform_0, window_bounds = array<i64: 8, 32>}, {pipeline_mode = #tpu.pipeline_mode<synchronous>, transform_indices = @transform_1, window_bounds = array<i64: 32, 128>}, {pipeline_mode = #tpu.pipeline_mode<synchronous>, transform_indices = @transform_2, window_bounds = array<i64: 1, 128>}, {pipeline_mode = #tpu.pipeline_mode<synchronous>, transform_indices = @transform_3, window_bounds = array<i64: 128, 2>}, {pipeline_mode = #tpu.pipeline_mode<synchronous>, transform_indices = @transform_4, window_bounds = array<i64: 1, 2>}, {transform_indices = @transform_5, window_bounds = array<i64: 8, 2>}]} {
    %c0 = arith.constant 0 : index
    %c0_0 = arith.constant 0 : index
    %0 = vector.load %arg1[%c0, %c0_0] : memref<8x32xf32, #tpu.memory_space<vmem>>, vector<8x32xf32>
    %1 = arith.truncf %0 : vector<8x32xf32> to vector<8x32xbf16>
    %c0_1 = arith.constant 0 : index
    %c0_2 = arith.constant 0 : index
    %2 = vector.load %arg2[%c0_1, %c0_2] : memref<32x128xbf16, #tpu.memory_space<vmem>>, vector<32x128xbf16>
    %cst = arith.constant dense<0.000000e+00> : vector<8x128xf32>
    %3 = tpu.matmul %1, %2, %cst {dimension_numbers = #tpu.dot_dimension_numbers<[1], [0], [0], [1], [0, 0, 1, 1], [], []>} : vector<8x32xbf16>, vector<32x128xbf16>, vector<8x128xf32> -> vector<8x128xf32>
    %c0_3 = arith.constant 0 : index
    %c0_4 = arith.constant 0 : index
    %4 = vector.load %arg3[%c0_3, %c0_4] : memref<1x128xf32, #tpu.memory_space<vmem>>, vector<1x128xf32>
    %5 = vector.broadcast %4 : vector<1x128xf32> to vector<8x128xf32>
    %6 = arith.addf %3, %5 : vector<8x128xf32>
    %cst_5 = arith.constant 0.000000e+00 : f32
    %7 = vector.broadcast %cst_5 : f32 to vector<8x128xf32>
    %8 = arith.maximumf %6, %7 : vector<8x128xf32>
    %9 = arith.truncf %8 : vector<8x128xf32> to vector<8x128xbf16>
    %c0_6 = arith.constant 0 : index
    %c0_7 = arith.constant 0 : index
    %10 = vector.load %arg4[%c0_6, %c0_7] : memref<128x2xbf16, #tpu.memory_space<vmem>>, vector<128x2xbf16>
    %cst_8 = arith.constant dense<0.000000e+00> : vector<8x2xf32>
    %11 = tpu.matmul %9, %10, %cst_8 {dimension_numbers = #tpu.dot_dimension_numbers<[1], [0], [0], [1], [0, 0, 1, 1], [], []>} : vector<8x128xbf16>, vector<128x2xbf16>, vector<8x2xf32> -> vector<8x2xf32>
    %c0_9 = arith.constant 0 : index
    %c0_10 = arith.constant 0 : index
    %12 = vector.load %arg5[%c0_9, %c0_10] : memref<1x2xf32, #tpu.memory_space<vmem>>, vector<1x2xf32>
    %13 = vector.broadcast %12 : vector<1x2xf32> to vector<8x2xf32>
    %14 = arith.addf %11, %13 : vector<8x2xf32>
    %15 = arith.negf %14 : vector<8x2xf32>
    %16 = math.exp %15 : vector<8x2xf32>
    %cst_11 = arith.constant 1.000000e+00 : f32
    %17 = vector.broadcast %cst_11 : f32 to vector<8x2xf32>
    %18 = arith.addf %17, %16 : vector<8x2xf32>
    %19 = arith.divf %17, %18 : vector<8x2xf32>
    %c0_12 = arith.constant 0 : index
    %c0_13 = arith.constant 0 : index
    %20 = vector.load %arg6[%c0_12, %c0_13] : memref<8x2xf32, #tpu.memory_space<vmem>>, vector<8x2xf32>
    tpu.vector_store %arg6[%c0_12, %c0_13], %19 {strides = array<i32>} : memref<8x2xf32, #tpu.memory_space<vmem>>, vector<8x2xf32>,
    return
  }
  func.func @transform_0(%arg0: i32) -> (i32, i32) {
    %c0_i32 = arith.constant 0 : i32
    %c0_i32_0 = arith.constant 0 : i32
    return %arg0, %c0_i32 : i32, i32
  }
  func.func @transform_1(%arg0: i32) -> (i32, i32) {
    %c0_i32 = arith.constant 0 : i32
    %c0_i32_0 = arith.constant 0 : i32
    %c0_i32_1 = arith.constant 0 : i32
    return %c0_i32, %c0_i32_0 : i32, i32
  }
  func.func @transform_2(%arg0: i32) -> (i32, i32) {
    %c0_i32 = arith.constant 0 : i32
    %c0_i32_0 = arith.constant 0 : i32
    %c0_i32_1 = arith.constant 0 : i32
    return %c0_i32, %c0_i32_0 : i32, i32
  }
  func.func @transform_3(%arg0: i32) -> (i32, i32) {
    %c0_i32 = arith.constant 0 : i32
    %c0_i32_0 = arith.constant 0 : i32
    %c0_i32_1 = arith.constant 0 : i32
    return %c0_i32, %c0_i32_0 : i32, i32
  }
  func.func @transform_4(%arg0: i32) -> (i32, i32) {
    %c0_i32 = arith.constant 0 : i32
    %c0_i32_0 = arith.constant 0 : i32
    %c0_i32_1 = arith.constant 0 : i32
    return %c0_i32, %c0_i32_0 : i32, i32
  }
  func.func @transform_5(%arg0: i32) -> (i32, i32) {
    %c0_i32 = arith.constant 0 : i32
    %c0_i32_0 = arith.constant 0 : i32
    return %arg0, %c0_i32 : i32, i32
  }
}

</mosaic_0001>

<bundles_post_ra>
// kernel: tpu_custom_call.1
= control target key start
LH: loop header
LB: loop body
LE: loop exit
PB: predicated region body
PF: predicated region fallthrough
CT: control target
= control target key end

     0   :  { %v285_v0 = vmov 0.0   ;;  %vm286_vm0 = vmmov 0   ;;  %vm46_vm1 = vcmask 261120   ;;  %vm209_vm2 = vcmask 15360   ;;  %s359_s1 = inlined_call_operand.vmem [shape: bf16[32,128], index: 1, kind: input, shape index: {}]   ;;  %s360_s0 = inlined_call_operand.vmem [shape: f32[8,32], index: 0, kind: input, shape index: {}]   ;;  %s361_s3 = inlined_call_operand.vmem [shape: bf16[128,2], index: 3, kind: input, shape index: {}]   ;;  %s362_s2 = inlined_call_operand.vmem [shape: f32[1,128], index: 2, kind: input, shape index: {}]   ;;  %s363_s4 = inlined_call_operand.vmem [shape: f32[1,2], index: 4, kind: input, shape index: {}]   ;;  %s364_s5 = inlined_call_operand.vmem [shape: f32[8,2], index: 5, kind: output, shape index: {}]  }
   0x1   :  { %241 = vmatprep.subr.bf16.mxu0 %v285_v0  ;;  %v271_v1 = vld [vmem:[%s359_s1] sm:$0xff]   ;;  %245 = vmatprep.mubr.msk.bf16.mxu0 %vm286_vm0, %v285_v0  ;;  %v272_v2 = vld [vmem:[%s359_s1 + $0x8] sm:$0xff]   ;;  %v275_v7 = vld [vmem:[%s361_s3 + $0x10] sm:$0xff]  }
   0x2   :  { %249 = vmatprep.subr.bf16.mxu1 %v285_v0  ;;  %265 = vmatprep.mubr.msk.bf16.mxu1 %vm286_vm0, %v285_v0  ;;  %v21_v3 = vld [vmem:[%s360_s0] sm:$0xff]  ;;  %v274_v6 = vld [vmem:[%s361_s3 + $0x8] sm:$0xff]   ;;  %v276_v8 = vld [vmem:[%s361_s3 + $0x18] sm:$0xff]  }
   0x3   :  { %242 = vmatpush3.bf16.msra.mxu0 %v271_v1  ;;  %v273_v4 = vld [vmem:[%s361_s3] sm:$0xff]   ;;  %v22_v5 = vpack.c.bf16 %v21_v3, %v21_v3  ;;  %v278_v10 = vld [vmem:[%s361_s3 + $0x28] sm:$0xff]   ;;  %v279_v11 = vld [vmem:[%s361_s3 + $0x30] sm:$0xff]  }
   0x4   :  { %243 = vmatprep.subr.bf16.mxu0 %v285_v0  ;;  %250 = vmatpush3.bf16.msra.mxu1 %v273_v4  ;;  %v277_v9 = vld [vmem:[%s361_s3 + $0x20] sm:$0xff]   ;;  %v280_v12 = vld [vmem:[%s361_s3 + $0x38] sm:$0xff]  }
   0x5   :  { %251 = vmatprep.subr.bf16.mxu1 %v285_v0  ;;  %v215_v13 = vld [vmem:[%s362_s2] ss:$0 sm:$0xff] }
   0x6   :  { %v219_v21 = vld [vmem:[%s363_s4] ss:$0 sm:$0xff] }
   0x7   :  { %244 = vmatpush3.bf16.msra.mxu0 %v272_v2 }
   0x8   :  { %252 = vmatpush3.bf16.msra.mxu1 %v274_v6 }
   0x9   :  { %253 = vmatprep.subr.bf16.mxu1 %v285_v0 }
   0xa   :  { %246 = vmatmul.mubr.msk.bf16.vlgmr.msra.gmra.mrb[0].mxu0 %vm46_vm1, %v22_v5 }
   0xc   :  { %254 = vmatpush3.bf16.msra.mxu1 %v275_v7 }
   0xd   :  { %255 = vmatprep.subr.bf16.mxu1 %v285_v0 }
  0x10   :  { %256 = vmatpush3.bf16.msra.mxu1 %v276_v8 }
  0x11   :  { %257 = vmatprep.subr.bf16.mxu1 %v285_v0 }
  0x14   :  { %258 = vmatpush3.bf16.msra.mxu1 %v277_v9 }
  0x15   :  { %259 = vmatprep.subr.bf16.mxu1 %v285_v0 }
  0x18   :  { %260 = vmatpush3.bf16.msra.mxu1 %v278_v10 }
  0x19   :  { %261 = vmatprep.subr.bf16.mxu1 %v285_v0 }
  0x1c   :  { %262 = vmatpush3.bf16.msra.mxu1 %v279_v11 }
  0x1d   :  { %263 = vmatprep.subr.bf16.mxu1 %v285_v0 }
  0x20   :  { %264 = vmatpush3.bf16.msra.mxu1 %v280_v12 }
  0xdd   :  { %v84_v14 = vpop.f32.mrb[0].mxu0 }
  0xde   :  { %v85_v15 = vadd.f32 %v215_v13, %v84_v14  ;;  %v247_v16 = vpop.f32.mrb[1].mxu0 }
  0xdf   :  { %v87_v17 = vpop.f32.mrb[2].mxu0 }
  0xe0   :  { %v90_v18 = vmax.f32 %v85_v15, 0.0  ;;  %v248_v19 = vpop.f32.mrb[3].mxu0 }
  0xe2   :  { %v91_v20 = vpack.c.bf16 %v90_v18, %v90_v18 }
  0xe4   :  { %266 = vmatmul.mubr.bf16.vlgmr.msra.gmra.mrb[0].mxu1 %v91_v20 }
 0x1b7   :  { %v197_v22 = vpop.f32.mrb[0].mxu1 }
 0x1b8   :  { %v198_v23 = vadd.f32 %v219_v21, %v197_v22  ;;  %v267_v24 = vpop.f32.mrb[1].mxu1 }
 0x1b9   :  { %v200_v25 = vpop.f32.mrb[2].mxu1 }
 0x1ba   :  { %v228_v26 = vmul.f32 -1.442695, %v198_v23  ;;  %v268_v27 = vpop.f32.mrb[3].mxu1 }
 0x1bc   :  { %281 = vpow2.f32 %v228_v26 }
 0x1c6   :  { %v282_v28 = vpop.eup %281 }
 0x1c7   :  { %v206_v29 = vadd.f32 1.0, %v282_v28 }
 0x1c9   :  { %283 = vrcp.f32 %v206_v29 }
 0x1d3   :  { %v284_v30 = vpop.eup %283 }
 0x1d4   :  { %210 = vst.msk [vmem:[%s364_s5] sm:$0xff] %vm209_vm2, %v284_v30 }

</bundles_post_ra>
